<compile_context>
chip_gen: v5e
topology: v5e:2x2
jax: 0.10.0
libtpu: 0.0.40
codegen_flags: <defaults>
</compile_context>

<pallas_src>
import functools

import jax
import jax.numpy as jnp
from jax.experimental import pallas as pl
from jax.experimental.pallas import tpu as pltpu

NEG_SLOPE = 0.01
BN_EPS = 1e-5
LANE = 128


def _round_up(n, m):
    return ((n + m - 1) // m) * m


def _leaky_relu(x):
    return jnp.where(x > 0, x, NEG_SLOPE * x)


@functools.lru_cache(maxsize=1)
def _vmem_limit_bytes():
    # Per-generation scoped-VMEM budget (128 MiB physical on v5e/v6e, 64 MiB
    # per TC on v7x) with 20% headroom; falls back to 64 MiB if the query is
    # unavailable.
    try:
        cap = int(pltpu.get_tpu_info().vmem_capacity_bytes)
        return int(cap * 0.8)
    except Exception:
        return 64 * 1024 * 1024


def _make_kernel(depth, wp, out_dim, dot_dtype):
    """Kernel closure; depth, padded width and matmul dtype are trace-time
    constants. depth == 1 builds a kernel without the residual-weight operand."""
    has_wres = depth > 1

    def dot32(a, b):
        return jnp.dot(a.astype(dot_dtype), b.astype(dot_dtype),
                       preferred_element_type=jnp.float32)

    def kernel(*refs):
        if has_wres:
            x_ref, w0_ref, wres_ref, wf_ref, vec_ref, o_ref = refs
        else:
            x_ref, w0_ref, wf_ref, vec_ref, o_ref = refs

        def vrow(r, w):
            # One packed parameter row as a (1, w) slab (static slice).
            return vec_ref[r:r + 1, :w]

        def bn_lrelu_scaled(h, gamma, beta):
            # LeakyReLU then training-mode BatchNorm1d folded to a single
            # per-feature scale/shift.  One sweep over z for the stats; the
            # shift is returned separately so callers can fold it (together
            # with the following Linear bias) into one (1, w) row instead of
            # spending an extra (N, w) VPU pass.
            z = _leaky_relu(h)
            mu = jnp.mean(z, axis=0, keepdims=True)
            ms = jnp.mean(z * z, axis=0, keepdims=True)
            var = jnp.maximum(ms - mu * mu, 0.0)           # guard cancellation
            a = gamma * jax.lax.rsqrt(var + BN_EPS)        # (1, w)
            shift = beta - mu * a                          # (1, w)
            return z * a, shift                            # zn = z*a + shift

        # First Linear(input_dim -> width); x is unpadded (K = input_dim).
        h = dot32(x_ref[...], w0_ref[...]) + vrow(0, wp)

        # (depth - 1) preact residual blocks: h = h + Linear(BN(LeakyReLU(h))).
        # zn @ W + b == (z*a) @ W + (shift @ W + b): BN shift and Linear bias
        # collapse into one broadcast row (tiny 1-row matmul on the MXU).
        for i in range(depth - 1):
            base = 1 + 3 * i
            zs, shift = bn_lrelu_scaled(h, vrow(base, wp), vrow(base + 1, wp))
            w = wres_ref[i]
            row = dot32(shift, w) + vrow(base + 2, wp)
            h = h + (dot32(zs, w) + row)

        # Tail: LeakyReLU -> BatchNorm1d -> Linear(width -> 2*latent_dim).
        base = 1 + 3 * (depth - 1)
        zs, shift = bn_lrelu_scaled(h, vrow(base, wp), vrow(base + 1, wp))
        row = dot32(shift, wf_ref[...]) + vrow(base + 2, out_dim)
        o_ref[...] = dot32(zs, wf_ref[...]) + row

    return kernel


@functools.partial(jax.jit, static_argnames=("depth", "dot_dtype"))
def _forward_packed(x, packed, *, depth, dot_dtype):
    w0 = packed[0]
    wf = packed[-2]
    n, in_dim = x.shape
    wp = w0.shape[1]
    out_dim = wf.shape[1]

    operands = (x,) + tuple(packed)
    flops = 2 * n * (in_dim * wp + (depth - 1) * wp * wp + wp * out_dim)
    bytes_accessed = sum(int(a.size) * a.dtype.itemsize for a in operands)
    bytes_accessed += n * out_dim * 4

    vmem = pl.BlockSpec(memory_space=pltpu.MemorySpace.VMEM)
    return pl.pallas_call(
        _make_kernel(depth, wp, out_dim, dot_dtype),
        out_shape=jax.ShapeDtypeStruct((n, out_dim), jnp.float32),
        in_specs=[vmem] * len(operands),
        out_specs=vmem,
        compiler_params=pltpu.CompilerParams(
            vmem_limit_bytes=_vmem_limit_bytes()),
        cost_estimate=pl.CostEstimate(
            flops=int(flops),
            transcendentals=int(depth * wp),
            bytes_accessed=int(bytes_accessed)),
    )(*operands)


def _pad2(a, rows, cols):
    return jnp.pad(a, ((0, rows - a.shape[0]), (0, cols - a.shape[1])))


def pack_params(params, input_dim, width, depth, latent_dim,
                dot_dtype=jnp.float32):
    """Pack the flat PyTorch-layout parameter list into 3-4 operands:
    W0 (input_dim, wp), optional stacked residual weights (depth-1, wp, wp),
    Wf (wp, 2*latent_dim), and one (rows, vec_w) f32 slab holding every
    bias / gamma / beta row.  Zero padding keeps padded lanes exactly 0
    (see padding invariant in the module docstring comment)."""
    wp = _round_up(width, LANE)
    out_dim = 2 * latent_dim
    vec_w = max(wp, out_dim)

    it = iter(params)
    w0, b0 = next(it), next(it)
    w0p = _pad2(w0, input_dim, wp).astype(dot_dtype)
    vec_rows = [_pad2(b0, 1, vec_w)]

    wres_list = []
    for _ in range(depth - 1):
        gamma, beta = next(it), next(it)
        w, bias = next(it), next(it)
        vec_rows += [_pad2(gamma, 1, vec_w), _pad2(beta, 1, vec_w),
                     _pad2(bias, 1, vec_w)]
        wres_list.append(_pad2(w, wp, wp))

    gamma, beta = next(it), next(it)
    wf, bf = next(it), next(it)
    vec_rows += [_pad2(gamma, 1, vec_w), _pad2(beta, 1, vec_w),
                 _pad2(bf, 1, vec_w)]
    wfp = _pad2(wf, wp, out_dim).astype(dot_dtype)

    vecp = jnp.concatenate(vec_rows, axis=0).astype(jnp.float32)
    if wres_list:
        wresp = jnp.stack(wres_list, axis=0).astype(dot_dtype)
        return (w0p, wresp, wfp, vecp)
    # depth == 1: no residual-weight operand at all (no dummy DMA/VMEM).
    return (w0p, wfp, vecp)


@functools.partial(
    jax.jit,
    static_argnames=("input_dim", "width", "depth", "latent_dim",
                     "use_bf16_matmul"))
def mlp_preact_recognition_forward(x, params, *, input_dim, width, depth,
                                   latent_dim, use_bf16_matmul=False):
    # x goes in unpadded (no extra HBM pad round trip); the output comes out
    # at its natural (N, 2*latent_dim) shape, no post-slice.
    dot_dtype = jnp.bfloat16 if use_bf16_matmul else jnp.float32
    packed = pack_params(params, input_dim, width, depth, latent_dim,
                         dot_dtype)
    return _forward_packed(x, packed, depth=depth, dot_dtype=dot_dtype)


def init_params(key, input_dim, width, depth, latent_dim):
    """Deterministic PyTorch-style init. Linear: U(-1/sqrt(fan_in), +...)."""

    def linear(k, fan_in, fan_out):
        k1, k2 = jax.random.split(k)
        bound = 1.0 / float(fan_in) ** 0.5
        w = jax.random.uniform(k1, (fan_in, fan_out), jnp.float32, -bound, bound)
        b = jax.random.uniform(k2, (1, fan_out), jnp.float32, -bound, bound)
        return w, b

    keys = jax.random.split(key, depth + 1)
    params = []
    w0, b0 = linear(keys[0], input_dim, width)
    params += [w0, b0]
    for i in range(depth - 1):
        gamma = jnp.ones((1, width), jnp.float32)   # BN default init
        beta = jnp.zeros((1, width), jnp.float32)
        w, b = linear(keys[1 + i], width, width)
        params += [gamma, beta, w, b]
    gamma = jnp.ones((1, width), jnp.float32)
    beta = jnp.zeros((1, width), jnp.float32)
    wf, bf = linear(keys[depth], width, 2 * latent_dim)
    params += [gamma, beta, wf, bf]
    return params


def _batchnorm1d_train(x, gamma, beta):
    mu = jnp.mean(x, axis=0, keepdims=True)
    var = jnp.mean((x - mu) * (x - mu), axis=0, keepdims=True)
    return (x - mu) * jax.lax.rsqrt(var + BN_EPS) * gamma + beta


def reference_forward(x, params, depth):
    """Pure-JAX reference mirroring the PyTorch module (unpadded)."""
    it = iter(params)
    w0, b0 = next(it), next(it)
    h = x @ w0 + b0
    for _ in range(depth - 1):
        g, b = next(it), next(it)
        w, bias = next(it), next(it)
        z = _batchnorm1d_train(_leaky_relu(h), g, b)
        h = h + z @ w + bias
    g, b = next(it), next(it)
    wf, bf = next(it), next(it)
    z = _batchnorm1d_train(_leaky_relu(h), g, b)
    return z @ wf + bf


if __name__ == "__main__":
    # Small MLP config: input_dim=32, width=32, depth=3, latent_dim=4, batch=8
    INPUT_DIM, WIDTH, DEPTH, LATENT_DIM, BATCH = 32, 32, 3, 4, 8

    key = jax.random.PRNGKey(0)
    kx, kp = jax.random.split(key)
    x = jax.random.normal(kx, (BATCH, INPUT_DIM), jnp.float32)
    params = init_params(kp, INPUT_DIM, WIDTH, DEPTH, LATENT_DIM)

    out = mlp_preact_recognition_forward(
        x, tuple(params),
        input_dim=INPUT_DIM, width=WIDTH, depth=DEPTH, latent_dim=LATENT_DIM)
    out = jax.block_until_ready(out)

    ref = reference_forward(x, params, DEPTH)
    assert out.shape == (BATCH, 2 * LATENT_DIM), out.shape
    assert jnp.allclose(out, ref, atol=2e-4, rtol=2e-4), "mismatch vs reference"

    print("KERNEL_OK")
</pallas_src>

<mosaic_0001>
module attributes {stable_mosaic.version = 11 : i64} {
  func.func @kernel(%arg0: memref<8x32xf32, #tpu.memory_space<vmem>>, %arg1: memref<32x128xf32, #tpu.memory_space<vmem>>, %arg2: memref<2x128x128xf32, #tpu.memory_space<vmem>>, %arg3: memref<128x8xf32, #tpu.memory_space<vmem>>, %arg4: memref<10x128xf32, #tpu.memory_space<vmem>>, %arg5: memref<8x8xf32, #tpu.memory_space<vmem>>) attributes {dimension_semantics = [], scalar_prefetch = 0 : i64, scratch_operands = 0 : i64, tpu.core_type = #tpu.core_type<tc>} {
    %c0 = arith.constant 0 : index
    %c0_0 = arith.constant 0 : index
    %0 = vector.load %arg0[%c0, %c0_0] : memref<8x32xf32, #tpu.memory_space<vmem>>, vector<8x32xf32>
    %c0_1 = arith.constant 0 : index
    %c0_2 = arith.constant 0 : index
    %1 = vector.load %arg1[%c0_1, %c0_2] : memref<32x128xf32, #tpu.memory_space<vmem>>, vector<32x128xf32>
    %cst = arith.constant dense<0.000000e+00> : vector<8x128xf32>
    %2 = tpu.matmul %0, %1, %cst {dimension_numbers = #tpu.dot_dimension_numbers<[1], [0], [0], [1], [0, 0, 1, 1], [], []>} : vector<8x32xf32>, vector<32x128xf32>, vector<8x128xf32> -> vector<8x128xf32>
    %c0_3 = arith.constant 0 : index
    %c0_4 = arith.constant 0 : index
    %3 = vector.load %arg4[%c0_3, %c0_4] : memref<10x128xf32, #tpu.memory_space<vmem>>, vector<1x128xf32>
    %4 = vector.broadcast %3 : vector<1x128xf32> to vector<8x128xf32>
    %5 = arith.addf %2, %4 : vector<8x128xf32>
    %c1 = arith.constant 1 : index
    %c0_5 = arith.constant 0 : index
    %6 = vector.load %arg4[%c1, %c0_5] : memref<10x128xf32, #tpu.memory_space<vmem>>, vector<1x128xf32>
    %c2 = arith.constant 2 : index
    %c0_6 = arith.constant 0 : index
    %7 = vector.load %arg4[%c2, %c0_6] : memref<10x128xf32, #tpu.memory_space<vmem>>, vector<1x128xf32>
    %cst_7 = arith.constant 0.000000e+00 : f32
    %8 = vector.broadcast %cst_7 : f32 to vector<8x128xf32>
    %9 = arith.cmpf ogt, %5, %8 : vector<8x128xf32>
    %cst_8 = arith.constant 0.00999999977 : f32
    %10 = vector.broadcast %cst_8 : f32 to vector<8x128xf32>
    %11 = arith.mulf %10, %5 : vector<8x128xf32>
    %12 = arith.select %9, %5, %11 : vector<8x128xi1>, vector<8x128xf32>
    %cst_9 = arith.constant dense<0.000000e+00> : vector<128xf32>
    %13 = vector.multi_reduction <add>, %12, %cst_9 [0] : vector<8x128xf32> to vector<128xf32>
    %14 = vector.shape_cast %13 : vector<128xf32> to vector<1x128xf32>
    %cst_10 = arith.constant 8.000000e+00 : f32
    %15 = vector.broadcast %cst_10 : f32 to vector<1x128xf32>
    %16 = arith.divf %14, %15 : vector<1x128xf32>
    %17 = arith.mulf %12, %12 : vector<8x128xf32>
    %cst_11 = arith.constant dense<0.000000e+00> : vector<128xf32>
    %18 = vector.multi_reduction <add>, %17, %cst_11 [0] : vector<8x128xf32> to vector<128xf32>
    %19 = vector.shape_cast %18 : vector<128xf32> to vector<1x128xf32>
    %cst_12 = arith.constant 8.000000e+00 : f32
    %20 = vector.broadcast %cst_12 : f32 to vector<1x128xf32>
    %21 = arith.divf %19, %20 : vector<1x128xf32>
    %22 = arith.mulf %16, %16 : vector<1x128xf32>
    %23 = arith.subf %21, %22 : vector<1x128xf32>
    %cst_13 = arith.constant 0.000000e+00 : f32
    %24 = vector.broadcast %cst_13 : f32 to vector<1x128xf32>
    %25 = arith.maximumf %23, %24 : vector<1x128xf32>
    %cst_14 = arith.constant 9.99999974E-6 : f32
    %26 = vector.broadcast %cst_14 : f32 to vector<1x128xf32>
    %27 = arith.addf %25, %26 : vector<1x128xf32>
    %28 = math.rsqrt %27 : vector<1x128xf32>
    %29 = arith.mulf %6, %28 : vector<1x128xf32>
    %30 = arith.mulf %16, %29 : vector<1x128xf32>
    %31 = arith.subf %7, %30 : vector<1x128xf32>
    %32 = vector.broadcast %29 : vector<1x128xf32> to vector<8x128xf32>
    %33 = arith.mulf %12, %32 : vector<8x128xf32>
    %c0_15 = arith.constant 0 : index
    %c0_16 = arith.constant 0 : index
    %c0_17 = arith.constant 0 : index
    %34 = vector.load %arg2[%c0_15, %c0_16, %c0_17] : memref<2x128x128xf32, #tpu.memory_space<vmem>>, vector<1x128x128xf32>
    %35 = vector.shape_cast %34 : vector<1x128x128xf32> to vector<128x128xf32>
    %cst_18 = arith.constant dense<0.000000e+00> : vector<1x128xf32>
    %36 = tpu.matmul %31, %35, %cst_18 {dimension_numbers = #tpu.dot_dimension_numbers<[1], [0], [0], [1], [0, 0, 1, 1], [], []>} : vector<1x128xf32>, vector<128x128xf32>, vector<1x128xf32> -> vector<1x128xf32>
    %c3 = arith.constant 3 : index
    %c0_19 = arith.constant 0 : index
    %37 = vector.load %arg4[%c3, %c0_19] : memref<10x128xf32, #tpu.memory_space<vmem>>, vector<1x128xf32>
    %38 = arith.addf %36, %37 : vector<1x128xf32>
    %cst_20 = arith.constant dense<0.000000e+00> : vector<8x128xf32>
    %39 = tpu.matmul %33, %35, %cst_20 {dimension_numbers = #tpu.dot_dimension_numbers<[1], [0], [0], [1], [0, 0, 1, 1], [], []>} : vector<8x128xf32>, vector<128x128xf32>, vector<8x128xf32> -> vector<8x128xf32>
    %40 = vector.broadcast %38 : vector<1x128xf32> to vector<8x128xf32>
    %41 = arith.addf %39, %40 : vector<8x128xf32>
    %42 = arith.addf %5, %41 : vector<8x128xf32>
    %c4 = arith.constant 4 : index
    %c0_21 = arith.constant 0 : index
    %43 = vector.load %arg4[%c4, %c0_21] : memref<10x128xf32, #tpu.memory_space<vmem>>, vector<1x128xf32>
    %c5 = arith.constant 5 : index
    %c0_22 = arith.constant 0 : index
    %44 = vector.load %arg4[%c5, %c0_22] : memref<10x128xf32, #tpu.memory_space<vmem>>, vector<1x128xf32>
    %cst_23 = arith.constant 0.000000e+00 : f32
    %45 = vector.broadcast %cst_23 : f32 to vector<8x128xf32>
    %46 = arith.cmpf ogt, %42, %45 : vector<8x128xf32>
    %cst_24 = arith.constant 0.00999999977 : f32
    %47 = vector.broadcast %cst_24 : f32 to vector<8x128xf32>
    %48 = arith.mulf %47, %42 : vector<8x128xf32>
    %49 = arith.select %46, %42, %48 : vector<8x128xi1>, vector<8x128xf32>
    %cst_25 = arith.constant dense<0.000000e+00> : vector<128xf32>
    %50 = vector.multi_reduction <add>, %49, %cst_25 [0] : vector<8x128xf32> to vector<128xf32>
    %51 = vector.shape_cast %50 : vector<128xf32> to vector<1x128xf32>
    %cst_26 = arith.constant 8.000000e+00 : f32
    %52 = vector.broadcast %cst_26 : f32 to vector<1x128xf32>
    %53 = arith.divf %51, %52 : vector<1x128xf32>
    %54 = arith.mulf %49, %49 : vector<8x128xf32>
    %cst_27 = arith.constant dense<0.000000e+00> : vector<128xf32>
    %55 = vector.multi_reduction <add>, %54, %cst_27 [0] : vector<8x128xf32> to vector<128xf32>
    %56 = vector.shape_cast %55 : vector<128xf32> to vector<1x128xf32>
    %cst_28 = arith.constant 8.000000e+00 : f32
    %57 = vector.broadcast %cst_28 : f32 to vector<1x128xf32>
    %58 = arith.divf %56, %57 : vector<1x128xf32>
    %59 = arith.mulf %53, %53 : vector<1x128xf32>
    %60 = arith.subf %58, %59 : vector<1x128xf32>
    %cst_29 = arith.constant 0.000000e+00 : f32
    %61 = vector.broadcast %cst_29 : f32 to vector<1x128xf32>
    %62 = arith.maximumf %60, %61 : vector<1x128xf32>
    %cst_30 = arith.constant 9.99999974E-6 : f32
    %63 = vector.broadcast %cst_30 : f32 to vector<1x128xf32>
    %64 = arith.addf %62, %63 : vector<1x128xf32>
    %65 = math.rsqrt %64 : vector<1x128xf32>
    %66 = arith.mulf %43, %65 : vector<1x128xf32>
    %67 = arith.mulf %53, %66 : vector<1x128xf32>
    %68 = arith.subf %44, %67 : vector<1x128xf32>
    %69 = vector.broadcast %66 : vector<1x128xf32> to vector<8x128xf32>
    %70 = arith.mulf %49, %69 : vector<8x128xf32>
    %c1_31 = arith.constant 1 : index
    %c0_32 = arith.constant 0 : index
    %c0_33 = arith.constant 0 : index
    %71 = vector.load %arg2[%c1_31, %c0_32, %c0_33] : memref<2x128x128xf32, #tpu.memory_space<vmem>>, vector<1x128x128xf32>
    %72 = vector.shape_cast %71 : vector<1x128x128xf32> to vector<128x128xf32>
    %cst_34 = arith.constant dense<0.000000e+00> : vector<1x128xf32>
    %73 = tpu.matmul %68, %72, %cst_34 {dimension_numbers = #tpu.dot_dimension_numbers<[1], [0], [0], [1], [0, 0, 1, 1], [], []>} : vector<1x128xf32>, vector<128x128xf32>, vector<1x128xf32> -> vector<1x128xf32>
    %c6 = arith.constant 6 : index
    %c0_35 = arith.constant 0 : index
    %74 = vector.load %arg4[%c6, %c0_35] : memref<10x128xf32, #tpu.memory_space<vmem>>, vector<1x128xf32>
    %75 = arith.addf %73, %74 : vector<1x128xf32>
    %cst_36 = arith.constant dense<0.000000e+00> : vector<8x128xf32>
    %76 = tpu.matmul %70, %72, %cst_36 {dimension_numbers = #tpu.dot_dimension_numbers<[1], [0], [0], [1], [0, 0, 1, 1], [], []>} : vector<8x128xf32>, vector<128x128xf32>, vector<8x128xf32> -> vector<8x128xf32>
    %77 = vector.broadcast %75 : vector<1x128xf32> to vector<8x128xf32>
    %78 = arith.addf %76, %77 : vector<8x128xf32>
    %79 = arith.addf %42, %78 : vector<8x128xf32>
    %c7 = arith.constant 7 : index
    %c0_37 = arith.constant 0 : index
    %80 = vector.load %arg4[%c7, %c0_37] : memref<10x128xf32, #tpu.memory_space<vmem>>, vector<1x128xf32>
    %c8 = arith.constant 8 : index
    %c0_38 = arith.constant 0 : index
    %81 = vector.load %arg4[%c8, %c0_38] : memref<10x128xf32, #tpu.memory_space<vmem>>, vector<1x128xf32>
    %cst_39 = arith.constant 0.000000e+00 : f32
    %82 = vector.broadcast %cst_39 : f32 to vector<8x128xf32>
    %83 = arith.cmpf ogt, %79, %82 : vector<8x128xf32>
    %cst_40 = arith.constant 0.00999999977 : f32
    %84 = vector.broadcast %cst_40 : f32 to vector<8x128xf32>
    %85 = arith.mulf %84, %79 : vector<8x128xf32>
    %86 = arith.select %83, %79, %85 : vector<8x128xi1>, vector<8x128xf32>
    %cst_41 = arith.constant dense<0.000000e+00> : vector<128xf32>
    %87 = vector.multi_reduction <add>, %86, %cst_41 [0] : vector<8x128xf32> to vector<128xf32>
    %88 = vector.shape_cast %87 : vector<128xf32> to vector<1x128xf32>
    %cst_42 = arith.constant 8.000000e+00 : f32
    %89 = vector.broadcast %cst_42 : f32 to vector<1x128xf32>
    %90 = arith.divf %88, %89 : vector<1x128xf32>
    %91 = arith.mulf %86, %86 : vector<8x128xf32>
    %cst_43 = arith.constant dense<0.000000e+00> : vector<128xf32>
    %92 = vector.multi_reduction <add>, %91, %cst_43 [0] : vector<8x128xf32> to vector<128xf32>
    %93 = vector.shape_cast %92 : vector<128xf32> to vector<1x128xf32>
    %cst_44 = arith.constant 8.000000e+00 : f32
    %94 = vector.broadcast %cst_44 : f32 to vector<1x128xf32>
    %95 = arith.divf %93, %94 : vector<1x128xf32>
    %96 = arith.mulf %90, %90 : vector<1x128xf32>
    %97 = arith.subf %95, %96 : vector<1x128xf32>
    %cst_45 = arith.constant 0.000000e+00 : f32
    %98 = vector.broadcast %cst_45 : f32 to vector<1x128xf32>
    %99 = arith.maximumf %97, %98 : vector<1x128xf32>
    %cst_46 = arith.constant 9.99999974E-6 : f32
    %100 = vector.broadcast %cst_46 : f32 to vector<1x128xf32>
    %101 = arith.addf %99, %100 : vector<1x128xf32>
    %102 = math.rsqrt %101 : vector<1x128xf32>
    %103 = arith.mulf %80, %102 : vector<1x128xf32>
    %104 = arith.mulf %90, %103 : vector<1x128xf32>
    %105 = arith.subf %81, %104 : vector<1x128xf32>
    %106 = vector.broadcast %103 : vector<1x128xf32> to vector<8x128xf32>
    %107 = arith.mulf %86, %106 : vector<8x128xf32>
    %c0_47 = arith.constant 0 : index
    %c0_48 = arith.constant 0 : index
    %108 = vector.load %arg3[%c0_47, %c0_48] : memref<128x8xf32, #tpu.memory_space<vmem>>, vector<128x8xf32>
    %cst_49 = arith.constant dense<0.000000e+00> : vector<1x8xf32>
    %109 = tpu.matmul %105, %108, %cst_49 {dimension_numbers = #tpu.dot_dimension_numbers<[1], [0], [0], [1], [0, 0, 1, 1], [], []>} : vector<1x128xf32>, vector<128x8xf32>, vector<1x8xf32> -> vector<1x8xf32>
    %c9 = arith.constant 9 : index
    %c0_50 = arith.constant 0 : index
    %110 = vector.load %arg4[%c9, %c0_50] : memref<10x128xf32, #tpu.memory_space<vmem>>, vector<1x8xf32>
    %111 = arith.addf %109, %110 : vector<1x8xf32>
    %c0_51 = arith.constant 0 : index
    %c0_52 = arith.constant 0 : index
    %112 = vector.load %arg3[%c0_51, %c0_52] : memref<128x8xf32, #tpu.memory_space<vmem>>, vector<128x8xf32>
    %cst_53 = arith.constant dense<0.000000e+00> : vector<8x8xf32>
    %113 = tpu.matmul %107, %112, %cst_53 {dimension_numbers = #tpu.dot_dimension_numbers<[1], [0], [0], [1], [0, 0, 1, 1], [], []>} : vector<8x128xf32>, vector<128x8xf32>, vector<8x8xf32> -> vector<8x8xf32>
    %114 = vector.broadcast %111 : vector<1x8xf32> to vector<8x8xf32>
    %115 = arith.addf %113, %114 : vector<8x8xf32>
    %c0_54 = arith.constant 0 : index
    %c0_55 = arith.constant 0 : index
    %116 = vector.load %arg5[%c0_54, %c0_55] : memref<8x8xf32, #tpu.memory_space<vmem>>, vector<8x8xf32>
    tpu.vector_store %arg5[%c0_54, %c0_55], %115 {strides = array<i32>} : memref<8x8xf32, #tpu.memory_space<vmem>>, vector<8x8xf32>,
    return
  }
}

</mosaic_0001>

<bundles_post_ra>
// kernel: _forward_packed.1
= control target key start
LH: loop header
LB: loop body
LE: loop exit
PB: predicated region body
PF: predicated region fallthrough
CT: control target
= control target key end

     0   :  { %10 = vsyncpa [#allocation3], 0  ;;  %s609_s0 = inlined_call_operand.vmem [shape: f32[8,32], index: 0, kind: input, shape index: {}]   ;;  %s610_s1 = inlined_call_operand.vmem [shape: f32[32,128], index: 1, kind: input, shape index: {}]   ;;  %s611_s2 = inlined_call_operand.hbm [shape: f32[2,128,128], index: 2, kind: input, shape index: {}]   ;;  %s612_s3 = inlined_call_operand.vmem [shape: f32[128,8], index: 3, kind: input, shape index: {}]   ;;  %s613_s4 = inlined_call_operand.vmem [shape: f32[10,128], index: 4, kind: input, shape index: {}]   ;;  %s614_s5 = inlined_call_operand.hbm [shape: f32[8,8], index: 5, kind: output, shape index: {}]  }
   0x1   :  { %11 = vsyncpa [#allocation4], 0  ;;  %s20_s20 = sshll.u32 %s611_s2, 4  ;;  %s455_s21 = smov [#allocation2]   ;;  %s21_s20 = int_to_ptr.hbm [resolvable:$true] %s20_s20 }
   0x2   :  { %s22_s22 = sshll.u32 %s455_s21, 4  ;;  %s456_s23 = smov 128   ;;  %s23_s22 = int_to_ptr.vmem [resolvable:$true] %s22_s22 }
   0x3   :  { %s457_s24 = smov 8  }
   0x4   :  { %28 = dma.hbm_to_vmem [thread:$0]  %s21_s20, 4096, %s23_s22, [#allocation3], %s456_s23, %s456_s23, %s457_s24  }
   0x5   :  { %451 = dma.done.wait [#allocation3], 4096  }
   0x6   :  { %452 = vsyncadd [#allocation3], 4294963200  ;;  %v41_v0 = vld [vmem:[%s610_s1 + $0x18] sm:$0xff]  ;;  %v40_v1 = vld [vmem:[%s610_s1 + $0x10] sm:$0xff]  ;;  %vm44_vm0 = vcmask 261120   ;;  %v458_v12 = vmov 8.0  }
   0x7   :  { %60 = vmatpush.msra.mxu0 %v41_v0  ;;  %v39_v2 = vld [vmem:[%s610_s1 + $0x8] sm:$0xff]  ;;  %v38_v3 = vld [vmem:[%s610_s1] sm:$0xff]  ;;  %v129_v5 = vld [vmem:[#allocation2 + $0x78] sm:$0xff]  ;;  %395 = vrcp.f32 %v458_v12  ;;  %s459_s2 = smov [#allocation5]   ;;  %s378_s8 = sshll.u32 %s614_s5, 4  ;;  %vm369_vm14 = vcmask 64512   ;;  %s379_s8 = int_to_ptr.hbm [resolvable:$true] %s378_s8 }
   0x8   :  { %v37_v4 = vld [vmem:[%s609_s0] sm:$0xff]  ;;  %v128_v6 = vld [vmem:[#allocation2 + $0x70] sm:$0xff]  ;;  %131 = vmatpush.msra.mxu1 %v129_v5  ;;  %152 = vmatpush.msra.mxu2 %v129_v5  ;;  %v127_v7 = vld [vmem:[#allocation2 + $0x68] sm:$0xff]  ;;  %s376_s30 = sshll.u32 %s459_s2, 4  ;;  %s377_s30 = int_to_ptr.vmem [resolvable:$true] %s376_s30 }
   0x9   :  { %61 = vmatpush.msra.mxu0 %v40_v1  ;;  %v126_v8 = vld [vmem:[#allocation2 + $0x60] sm:$0xff]  ;;  %v125_v9 = vld [vmem:[#allocation2 + $0x58] sm:$0xff]  ;;  %v124_v10 = vld [vmem:[#allocation2 + $0x50] sm:$0xff] }
   0xa   :  { %132 = vmatpush.msra.mxu1 %v128_v6  ;;  %153 = vmatpush.msra.mxu2 %v128_v6  ;;  %v123_v11 = vld [vmem:[#allocation2 + $0x48] sm:$0xff]  ;;  %v122_v13 = vld [vmem:[#allocation2 + $0x40] sm:$0xff]  ;;  %v121_v14 = vld [vmem:[#allocation2 + $0x38] sm:$0xff] }
   0xb   :  { %62 = vmatpush.msra.mxu0 %v39_v2  ;;  %v120_v16 = vld [vmem:[#allocation2 + $0x30] sm:$0xff]  ;;  %v394_v17 = vld [vmem:[%s613_s4] ss:$0 sm:$0xff]  ;;  %v119_v18 = vld [vmem:[#allocation2 + $0x28] sm:$0xff] }
   0xc   :  { %133 = vmatpush.msra.mxu1 %v127_v7  ;;  %154 = vmatpush.msra.mxu2 %v127_v7  ;;  %v118_v21 = vld [vmem:[#allocation2 + $0x20] sm:$0xff]  ;;  %v117_v23 = vld [vmem:[#allocation2 + $0x18] sm:$0xff]  ;;  %v116_v26 = vld [vmem:[#allocation2 + $0x10] sm:$0xff] }
   0xd   :  { %63 = vmatpush.msra.mxu0 %v38_v3  ;;  %v396_v15 = vpop.eup %395  ;;  %v115_v30 = vld [vmem:[#allocation2 + $0x8] sm:$0xff]  ;;  %v114_v33 = vld [vmem:[#allocation2] sm:$0xff]  ;;  %v228_v2 = vld [vmem:[#allocation2 + $0xf8] sm:$0xff] }
   0xe   :  { %388 = vmatmul.msk.f32.vlgmr.msra.gmra.mxu0 %vm44_vm0, %v37_v4  ;;  %134 = vmatpush.msra.mxu1 %v126_v8  ;;  %v80_v19 = vmul.f32 8.0, %v396_v15  ;;  %vm84_vm2 = vweird.f32 %v396_v15  ;;  %v68_v57 = vld [vmem:[%s613_s4 + $0x1] sm:$0x1]  ;;  %v69_v61 = vld [vmem:[%s613_s4 + $0x2] sm:$0x1]  ;;  %v227_v3 = vld [vmem:[#allocation2 + $0xf0] sm:$0xff] }
   0xf   :  { %155 = vmatpush.msra.mxu2 %v126_v8  ;;  %230 = vmatpush.msra.mxu3 %v228_v2  ;;  %v226_v4 = vld [vmem:[#allocation2 + $0xe8] sm:$0xff]  ;;  %v225_v5 = vld [vmem:[#allocation2 + $0xe0] sm:$0xff]  ;;  %v224_v6 = vld [vmem:[#allocation2 + $0xd8] sm:$0xff] }
  0x10   :  { %135 = vmatpush.msra.mxu1 %v125_v9  ;;  %v81_v25 = vsub.f32 1.0, %v80_v19  ;;  %251 = vmatpush.msrb.mxu0 %v228_v2  ;;  %v223_v7 = vld [vmem:[#allocation2 + $0xd0] sm:$0xff]  ;;  %v222_v8 = vld [vmem:[#allocation2 + $0xc8] sm:$0xff]  ;;  %v220_v12 = vld [vmem:[#allocation2 + $0xb8] sm:$0xff] }
  0x11   :  { %156 = vmatpush.msra.mxu2 %v125_v9  ;;  %231 = vmatpush.msra.mxu3 %v227_v3  ;;  %v130_v9 = vld [vmem:[%s613_s4 + $0x3] sm:$0x1]  ;;  %v321_v2 = vld [vmem:[%s612_s3 + $0x50] sm:$0xff] }
  0x12   :  { %136 = vmatpush.msra.mxu1 %v124_v10  ;;  %v82_v31 = vmul.f32 %v396_v15, %v81_v25  ;;  %252 = vmatpush.msrb.mxu0 %v227_v3  ;;  %v214_v25 = vld [vmem:[#allocation2 + $0x88] sm:$0xff]  ;;  %v229_v3 = vld [vmem:[%s613_s4 + $0x6] sm:$0x1] }
  0x13   :  { %157 = vmatpush.msra.mxu2 %v124_v10  ;;  %232 = vmatpush.msra.mxu3 %v226_v4  ;;  %v221_v10 = vld [vmem:[#allocation2 + $0xc0] sm:$0xff] }
  0x14   :  { %137 = vmatpush.msra.mxu1 %v123_v11  ;;  %v83_v37 = vadd.f32 %v396_v15, %v82_v31  ;;  %253 = vmatpush.msrb.mxu0 %v226_v4  ;;  %v320_v4 = vld [vmem:[%s612_s3 + $0x48] sm:$0xff] }
  0x15   :  { %158 = vmatpush.msra.mxu2 %v123_v11  ;;  %233 = vmatpush.msra.mxu3 %v225_v5 }
  0x16   :  { %138 = vmatpush.msra.mxu1 %v122_v13  ;;  %v516_v42 = vsel %vm84_vm2, %v396_v15, %v83_v37  ;;  %254 = vmatpush.msrb.mxu0 %v225_v5  ;;  %v218_v15 = vld [vmem:[#allocation2 + $0xa8] sm:$0xff] }
  0x17   :  { %159 = vmatpush.msra.mxu2 %v122_v13  ;;  %234 = vmatpush.msra.mxu3 %v224_v6 }
  0x18   :  { %139 = vmatpush.msra.mxu1 %v121_v14  ;;  %255 = vmatpush.msrb.mxu0 %v224_v6  ;;  %v319_v6 = vld [vmem:[%s612_s3 + $0x40] sm:$0xff] }
  0x19   :  { %160 = vmatpush.msra.mxu2 %v121_v14  ;;  %235 = vmatpush.msra.mxu3 %v223_v7  ;;  %v219_v14 = vld [vmem:[#allocation2 + $0xb0] sm:$0xff] }
  0x1a   :  { %140 = vmatpush.msra.mxu1 %v120_v16  ;;  %256 = vmatpush.msrb.mxu0 %v223_v7 }
  0x1b   :  { %161 = vmatpush.msra.mxu2 %v120_v16  ;;  %236 = vmatpush.msra.mxu3 %v222_v8 }
  0x1c   :  { %141 = vmatpush.msra.mxu1 %v119_v18  ;;  %257 = vmatpush.msrb.mxu0 %v222_v8  ;;  %v318_v8 = vld [vmem:[%s612_s3 + $0x38] sm:$0xff] }
  0x1d   :  { %162 = vmatpush.msra.mxu2 %v119_v18  ;;  %237 = vmatpush.msra.mxu3 %v221_v10  ;;  %v217_v18 = vld [vmem:[#allocation2 + $0xa0] sm:$0xff] }
  0x1e   :  { %142 = vmatpush.msra.mxu1 %v118_v21  ;;  %258 = vmatpush.msrb.mxu0 %v221_v10 }
  0x1f   :  { %163 = vmatpush.msra.mxu2 %v118_v21  ;;  %238 = vmatpush.msra.mxu3 %v220_v12 }
  0x20   :  { %143 = vmatpush.msra.mxu1 %v117_v23  ;;  %259 = vmatpush.msrb.mxu0 %v220_v12 }
  0x21   :  { %164 = vmatpush.msra.mxu2 %v117_v23  ;;  %239 = vmatpush.msra.mxu3 %v219_v14  ;;  %v215_v23 = vld [vmem:[#allocation2 + $0x90] sm:$0xff] }
  0x22   :  { %144 = vmatpush.msra.mxu1 %v116_v26  ;;  %260 = vmatpush.msrb.mxu0 %v219_v14 }
  0x23   :  { %165 = vmatpush.msra.mxu2 %v116_v26  ;;  %240 = vmatpush.msra.mxu3 %v218_v15 }
  0x24   :  { %145 = vmatpush.msra.mxu1 %v115_v30  ;;  %261 = vmatpush.msrb.mxu0 %v218_v15  ;;  %v315_v15 = vld [vmem:[%s612_s3 + $0x20] sm:$0xff] }
  0x25   :  { %166 = vmatpush.msra.mxu2 %v115_v30  ;;  %241 = vmatpush.msra.mxu3 %v217_v18 }
  0x26   :  { %146 = vmatpush.msra.mxu1 %v114_v33  ;;  %262 = vmatpush.msrb.mxu0 %v217_v18 }
  0x27   :  { %167 = vmatpush.msra.mxu2 %v114_v33 }
  0x8b   :  { %v65_v20 = vpop.f32.mrf.mxu0 }
  0x8c   :  { %v511_v22 = vadd.f32 %v394_v17, %v65_v20  ;;  %v216_v20 = vld [vmem:[#allocation2 + $0x98] sm:$0xff] }
  0x8d   :  { %242 = vmatpush.msra.mxu3 %v216_v20  ;;  %263 = vmatpush.msrb.mxu0 %v216_v20 }
  0x8e   :  { %vm70_vm1 = vcmp.gt.f32.partialorder %v511_v22, 0.0  ;;  %v71_v24 = vmul.f32 0.01, %v511_v22 }
  0x8f   :  { %243 = vmatpush.msra.mxu3 %v215_v23  ;;  %264 = vmatpush.msrb.mxu0 %v215_v23 }
  0x90   :  { %v72_v27 = vsel %vm70_vm1, %v511_v22, %v71_v24 }
  0x91   :  { %v73_v28 = vrot.slane %v72_v27, 4  ;;  %v87_v29 = vmul.f32 %v72_v27, %v72_v27  ;;  %244 = vmatpush.msra.mxu3 %v214_v25  ;;  %265 = vmatpush.msrb.mxu0 %v214_v25  ;;  %v312_v25 = vld [vmem:[%s612_s3 + $0x8] sm:$0xff] }
  0x93   :  { %v88_v32 = vrot.slane %v87_v29, 4  ;;  %v74_v34 = vadd.f32 %v73_v28, %v72_v27  ;;  %v213_v28 = vld [vmem:[#allocation2 + $0x80] sm:$0xff] }
  0x94   :  { %245 = vmatpush.msra.mxu3 %v213_v28  ;;  %266 = vmatpush.msrb.mxu0 %v213_v28 }
  0x95   :  { %v89_v35 = vadd.f32 %v88_v32, %v87_v29  ;;  %v75_v36 = vrot.slane %v74_v34, 2 }
  0x97   :  { %v90_v38 = vrot.slane %v89_v35, 2  ;;  %v76_v39 = vadd.f32 %v75_v36, %v74_v34 }
  0x99   :  { %v77_v40 = vrot.slane %v76_v39, 1  ;;  %v91_v41 = vadd.f32 %v90_v38, %v89_v35 }
  0x9b   :  { %v78_v43 = vadd.f32 %v77_v40, %v76_v39  ;;  %v92_v44 = vrot.slane %v91_v41, 1 }
  0x9d   :  { %v86_v45 = vmul.f32 %v516_v42, %v78_v43  ;;  %v93_v46 = vadd.f32 %v92_v44, %v91_v41 }
  0x9f   :  { %v94_v47 = vmul.f32 %v93_v46, %v516_v42  ;;  %v95_v48 = vmul.f32 %v86_v45, %v86_v45 }
  0xa1   :  { %v96_v49 = vsub.f32 %v94_v47, %v95_v48 }
  0xa3   :  { %v97_v50 = vmax.f32 %v96_v49, 0.0 }
  0xa5   :  { %v98_v51 = vadd.f32 1e-05, %v97_v50 }
  0xa7   :  { %397 = vrsqrt.f32 %v98_v51  ;;  %vm105_vm4 = vweird.f32 %v98_v51 }
  0xad   :  { %v398_v52 = vpop.eup %397 }
  0xae   :  { %v100_v53 = vmul.f32 %v398_v52, %v98_v51  ;;  %vm106_vm3 = vweird.f32 %v398_v52 }
  0xaf   :  { %vm107_vm5 = vmor %vm105_vm4, %vm106_vm3 }
  0xb0   :  { %v101_v54 = vmul.f32 %v398_v52, %v100_v53 }
  0xb2   :  { %v102_v55 = vmul.f32 0.5, %v101_v54 }
  0xb4   :  { %v103_v56 = vsub.f32 1.5, %v102_v55 }
  0xb6   :  { %v104_v58 = vmul.f32 %v398_v52, %v103_v56  ;;  %v174_v56 = vld [vmem:[%s613_s4 + $0x5] sm:$0x1] }
  0xb8   :  { %v108_v59 = vsel %vm107_vm5, %v398_v52, %v104_v58  ;;  %v173_v52 = vld [vmem:[%s613_s4 + $0x4] sm:$0x1] }
  0xb9   :  { %v109_v60 = vmul.f32 %v108_v59, %v68_v57 }
  0xbb   :  { %v110_v62 = vmul.f32 %v109_v60, %v86_v45  ;;  %v112_v63 = vperm.slane %v109_v60, 0 }
  0xbd   :  { %v111_v0 = vsub.f32 %v69_v61, %v110_v62  ;;  %v113_v1 = vmul.f32 %v112_v63, %v72_v27  ;;  %v326_v61 = vld [vmem:[%s612_s3 + $0x78] sm:$0xff]  ;;  %v325_v62 = vld [vmem:[%s612_s3 + $0x70] sm:$0xff]  ;;  %v324_v63 = vld [vmem:[%s612_s3 + $0x68] sm:$0xff] }
  0xbe   :  { %328 = vmatpush.msrb.mxu1 %v326_v61  ;;  %349 = vmatpush.msrb.mxu2 %v326_v61 }
  0xbf   :  { %147 = vmatmul.f32.vlgmr.msra.gmra.mxu1 %v111_v0  ;;  %168 = vmatmul.f32.vlgmr.msra.gmra.mxu2 %v113_v1  ;;  %v323_v0 = vld [vmem:[%s612_s3 + $0x60] sm:$0xff]  ;;  %v322_v1 = vld [vmem:[%s612_s3 + $0x58] sm:$0xff] }
  0xc0   :  { %329 = vmatpush.msrb.mxu1 %v325_v62  ;;  %350 = vmatpush.msrb.mxu2 %v325_v62 }
  0xc2   :  { %330 = vmatpush.msrb.mxu1 %v324_v63  ;;  %351 = vmatpush.msrb.mxu2 %v324_v63 }
  0xc4   :  { %331 = vmatpush.msrb.mxu1 %v323_v0  ;;  %352 = vmatpush.msrb.mxu2 %v323_v0 }
  0xc6   :  { %332 = vmatpush.msrb.mxu1 %v322_v1  ;;  %353 = vmatpush.msrb.mxu2 %v322_v1 }
  0xc8   :  { %333 = vmatpush.msrb.mxu1 %v321_v2  ;;  %354 = vmatpush.msrb.mxu2 %v321_v2 }
  0xca   :  { %334 = vmatpush.msrb.mxu1 %v320_v4  ;;  %355 = vmatpush.msrb.mxu2 %v320_v4 }
  0xcc   :  { %335 = vmatpush.msrb.mxu1 %v319_v6  ;;  %356 = vmatpush.msrb.mxu2 %v319_v6 }
  0xce   :  { %336 = vmatpush.msrb.mxu1 %v318_v8  ;;  %357 = vmatpush.msrb.mxu2 %v318_v8 }
 0x13c   :  { %v148_v11 = vpop.f32.mrf.mxu1 }
 0x13d   :  { %v149_v13 = vadd.f32 %v148_v11, %v130_v9  ;;  %v317_v11 = vld [vmem:[%s612_s3 + $0x30] sm:$0xff] }
 0x13e   :  { %337 = vmatpush.msrb.mxu1 %v317_v11  ;;  %358 = vmatpush.msrb.mxu2 %v317_v11 }
 0x13f   :  { %v151_v16 = vperm.slane %v149_v13, 0  ;;  %v316_v13 = vld [vmem:[%s612_s3 + $0x28] sm:$0xff] }
 0x140   :  { %338 = vmatpush.msrb.mxu1 %v316_v13  ;;  %359 = vmatpush.msrb.mxu2 %v316_v13 }
 0x142   :  { %v169_v17 = vpop.f32.mrf.mxu2  ;;  %339 = vmatpush.msrb.mxu1 %v315_v15  ;;  %360 = vmatpush.msrb.mxu2 %v315_v15 }
 0x143   :  { %v170_v19 = vadd.f32 %v169_v17, %v151_v16  ;;  %v314_v17 = vld [vmem:[%s612_s3 + $0x18] sm:$0xff] }
 0x144   :  { %340 = vmatpush.msrb.mxu1 %v314_v17  ;;  %361 = vmatpush.msrb.mxu2 %v314_v17 }
 0x145   :  { %v530_v21 = vadd.f32 %v170_v19, %v511_v22 }
 0x147   :  { %vm175_vm6 = vcmp.gt.f32.partialorder %v530_v21, 0.0  ;;  %v176_v24 = vmul.f32 0.01, %v530_v21 }
 0x149   :  { %v177_v26 = vsel %vm175_vm6, %v530_v21, %v176_v24 }
 0x14a   :  { %v185_v27 = vmul.f32 %v177_v26, %v177_v26  ;;  %v178_v29 = vrot.slane %v177_v26, 4 }
 0x14c   :  { %v186_v22 = vrot.slane %v185_v27, 4  ;;  %v179_v30 = vadd.f32 %v178_v29, %v177_v26 }
 0x14e   :  { %v187_v31 = vadd.f32 %v186_v22, %v185_v27  ;;  %v180_v32 = vrot.slane %v179_v30, 2  ;;  %v311_v27 = vld [vmem:[%s612_s3] sm:$0xff] }
 0x150   :  { %v181_v33 = vadd.f32 %v180_v32, %v179_v30  ;;  %v188_v34 = vrot.slane %v187_v31, 2 }
 0x152   :  { %v182_v35 = vrot.slane %v181_v33, 1  ;;  %v189_v36 = vadd.f32 %v188_v34, %v187_v31 }
 0x154   :  { %v183_v37 = vadd.f32 %v182_v35, %v181_v33  ;;  %v190_v38 = vrot.slane %v189_v36, 1 }
 0x156   :  { %v184_v39 = vmul.f32 %v183_v37, %v516_v42  ;;  %v191_v40 = vadd.f32 %v190_v38, %v189_v36 }
 0x158   :  { %v192_v41 = vmul.f32 %v191_v40, %v516_v42  ;;  %v193_v43 = vmul.f32 %v184_v39, %v184_v39 }
 0x15a   :  { %v194_v44 = vsub.f32 %v192_v41, %v193_v43 }
 0x15c   :  { %v195_v45 = vmax.f32 %v194_v44, 0.0 }
 0x15e   :  { %v196_v46 = vadd.f32 1e-05, %v195_v45 }
 0x160   :  { %399 = vrsqrt.f32 %v196_v46  ;;  %vm203_vm8 = vweird.f32 %v196_v46 }
 0x166   :  { %v400_v47 = vpop.eup %399 }
 0x167   :  { %v198_v48 = vmul.f32 %v400_v47, %v196_v46  ;;  %vm204_vm7 = vweird.f32 %v400_v47 }
 0x168   :  { %vm205_vm9 = vmor %vm203_vm8, %vm204_vm7 }
 0x169   :  { %v199_v49 = vmul.f32 %v400_v47, %v198_v48 }
 0x16b   :  { %v200_v50 = vmul.f32 0.5, %v199_v49 }
 0x16d   :  { %v201_v51 = vsub.f32 1.5, %v200_v50  ;;  %v273_v50 = vld [vmem:[%s613_s4 + $0x8] sm:$0x1] }
 0x16f   :  { %v202_v53 = vmul.f32 %v400_v47, %v201_v51 }
 0x171   :  { %v206_v54 = vsel %vm205_vm9, %v400_v47, %v202_v53  ;;  %v272_v47 = vld [vmem:[%s613_s4 + $0x7] sm:$0x1] }
 0x172   :  { %v207_v55 = vmul.f32 %v206_v54, %v173_v52 }
 0x174   :  { %v208_v57 = vmul.f32 %v207_v55, %v184_v39  ;;  %v210_v58 = vperm.slane %v207_v55, 0  ;;  %v327_v55 = vld [vmem:[%s613_s4 + $0x9] sm:$0x1] }
 0x176   :  { %v209_v59 = vsub.f32 %v174_v56, %v208_v57  ;;  %v211_v60 = vmul.f32 %v210_v58, %v177_v26 }
 0x178   :  { %246 = vmatmul.f32.vlgmr.msra.gmra.mxu3 %v209_v59  ;;  %267 = vmatmul.f32.vlgmr.msrb.gmra.mxu0 %v211_v60 }
 0x1f5   :  { %v268_v10 = vpop.f32.mrf.mxu0 }
 0x1fb   :  { %v247_v5 = vpop.f32.mrf.mxu3 }
 0x1fc   :  { %v248_v7 = vadd.f32 %v247_v5, %v229_v3 }
 0x1fe   :  { %v250_v9 = vperm.slane %v248_v7, 0 }
 0x200   :  { %v269_v12 = vadd.f32 %v268_v10, %v250_v9 }
 0x202   :  { %v271_v14 = vadd.f32 %v269_v12, %v530_v21  ;;  %v313_v21 = vld [vmem:[%s612_s3 + $0x10] sm:$0xff] }
 0x203   :  { %341 = vmatpush.msrb.mxu1 %v313_v21  ;;  %362 = vmatpush.msrb.mxu2 %v313_v21 }
 0x204   :  { %vm274_vm10 = vcmp.gt.f32.partialorder %v271_v14, 0.0  ;;  %v275_v16 = vmul.f32 0.01, %v271_v14 }
 0x205   :  { %342 = vmatpush.msrb.mxu1 %v312_v25  ;;  %363 = vmatpush.msrb.mxu2 %v312_v25 }
 0x206   :  { %v276_v18 = vsel %vm274_vm10, %v271_v14, %v275_v16 }
 0x207   :  { %v277_v19 = vrot.slane %v276_v18, 4  ;;  %v284_v20 = vmul.f32 %v276_v18, %v276_v18  ;;  %343 = vmatpush.msrb.mxu1 %v311_v27  ;;  %364 = vmatpush.msrb.mxu2 %v311_v27 }
 0x209   :  { %v278_v23 = vadd.f32 %v277_v19, %v276_v18  ;;  %v285_v24 = vrot.slane %v284_v20, 4 }
 0x20b   :  { %v286_v26 = vadd.f32 %v285_v24, %v284_v20  ;;  %v279_v28 = vrot.slane %v278_v23, 2 }
 0x20d   :  { %v287_v29 = vrot.slane %v286_v26, 2  ;;  %v280_v22 = vadd.f32 %v279_v28, %v278_v23 }
 0x20f   :  { %v288_v30 = vadd.f32 %v287_v29, %v286_v26  ;;  %v281_v31 = vrot.slane %v280_v22, 1 }
 0x211   :  { %v282_v32 = vadd.f32 %v281_v31, %v280_v22  ;;  %v289_v33 = vrot.slane %v288_v30, 1 }
 0x213   :  { %v283_v34 = vmul.f32 %v282_v32, %v516_v42  ;;  %v290_v35 = vadd.f32 %v289_v33, %v288_v30 }
 0x215   :  { %v291_v36 = vmul.f32 %v290_v35, %v516_v42  ;;  %v292_v37 = vmul.f32 %v283_v34, %v283_v34 }
 0x217   :  { %v293_v38 = vsub.f32 %v291_v36, %v292_v37 }
 0x219   :  { %v294_v39 = vmax.f32 %v293_v38, 0.0 }
 0x21b   :  { %v295_v40 = vadd.f32 1e-05, %v294_v39 }
 0x21d   :  { %401 = vrsqrt.f32 %v295_v40  ;;  %vm302_vm12 = vweird.f32 %v295_v40 }
 0x223   :  { %v402_v41 = vpop.eup %401 }
 0x224   :  { %v297_v43 = vmul.f32 %v402_v41, %v295_v40  ;;  %vm303_vm11 = vweird.f32 %v402_v41 }
 0x225   :  { %vm304_vm13 = vmor %vm302_vm12, %vm303_vm11 }
 0x226   :  { %v298_v44 = vmul.f32 %v402_v41, %v297_v43 }
 0x228   :  { %v299_v45 = vmul.f32 0.5, %v298_v44 }
 0x22a   :  { %v300_v46 = vsub.f32 1.5, %v299_v45 }
 0x22c   :  { %v301_v48 = vmul.f32 %v402_v41, %v300_v46 }
 0x22e   :  { %v305_v49 = vsel %vm304_vm13, %v402_v41, %v301_v48 }
 0x22f   :  { %v306_v42 = vmul.f32 %v305_v49, %v272_v47 }
 0x231   :  { %v307_v51 = vmul.f32 %v306_v42, %v283_v34  ;;  %v309_v52 = vperm.slane %v306_v42, 0 }
 0x233   :  { %v308_v53 = vsub.f32 %v273_v50, %v307_v51  ;;  %v310_v54 = vmul.f32 %v309_v52, %v276_v18 }
 0x235   :  { %344 = vmatmul.f32.vlgmr.msrb.gmra.mxu1 %v308_v53  ;;  %365 = vmatmul.f32.vlgmr.msrb.gmra.mxu2 %v310_v54 }
 0x2b2   :  { %v345_v56 = vpop.f32.mrf.mxu1 }
 0x2b3   :  { %v346_v57 = vadd.f32 %v345_v56, %v327_v55 }
 0x2b5   :  { %v348_v58 = vperm.slane %v346_v57, 0 }
 0x2b8   :  { %v366_v59 = vpop.f32.mrf.mxu2 }
 0x2b9   :  { %v367_v60 = vadd.f32 %v366_v59, %v348_v58 }
 0x2bb   :  { %370 = vst.msk [vmem:[#allocation5] sm:$0xff] %vm369_vm14, %v367_v60 }
 0x2bc   :  { %381 = dma.vmem_to_hbm [thread:$0]  %s377_s30, 128, %s379_s8, [#allocation4]  }
 0x2bd   :  { %453 = dma.done.wait [#allocation4], 128  }
 0x2be   :  { %454 = vsyncadd [#allocation4], 4294967168 }
 0x2bf   :  { %386 = vsyncpa [#allocation3], 1 }
 0x2c0   :  { %387 = vsyncpa [#allocation4], 1 }

</bundles_post_ra>
